<compile_context>
chip_gen: v7x
topology: tpu7x:2x2x1
jax: 0.10.0
libtpu: 0.0.40
codegen_flags: <defaults>
</compile_context>

<pallas_src>
import math
import jax
import jax.numpy as jnp
from jax.experimental import pallas as pl
from jax.experimental.pallas import tpu as pltpu


# ---------------- kernels: multi-step K reduction (scratch accumulator) -------------

def _linear_bias_kernel(x_ref, w_ref, b_ref, o_ref, acc_ref):
    # x_ref : [tm, tk]   w_ref : [tk, tn]   b_ref : [1, tn]   o_ref : [tm, tn]
    # acc_ref: [tm, tn] f32 scratch accumulator (persists across the K grid axis)
    @pl.when(pl.program_id(2) == 0)
    def _():
        acc_ref[...] = jnp.zeros_like(acc_ref)

    acc_ref[...] += jnp.dot(
        x_ref[...], w_ref[...], preferred_element_type=jnp.float32
    )

    @pl.when(pl.program_id(2) == pl.num_programs(2) - 1)
    def _():
        o_ref[...] = (acc_ref[...] + b_ref[...].astype(jnp.float32)).astype(o_ref.dtype)


def _linear_nobias_kernel(x_ref, w_ref, o_ref, acc_ref):
    @pl.when(pl.program_id(2) == 0)
    def _():
        acc_ref[...] = jnp.zeros_like(acc_ref)

    acc_ref[...] += jnp.dot(
        x_ref[...], w_ref[...], preferred_element_type=jnp.float32
    )

    @pl.when(pl.program_id(2) == pl.num_programs(2) - 1)
    def _():
        o_ref[...] = acc_ref[...].astype(o_ref.dtype)


# ---------------- kernels: single K step (no scratch, MXU result -> output) ---------

def _linear_bias_kernel_1k(x_ref, w_ref, b_ref, o_ref):
    acc = jnp.dot(x_ref[...], w_ref[...], preferred_element_type=jnp.float32)
    o_ref[...] = (acc + b_ref[...].astype(jnp.float32)).astype(o_ref.dtype)


def _linear_nobias_kernel_1k(x_ref, w_ref, o_ref):
    acc = jnp.dot(x_ref[...], w_ref[...], preferred_element_type=jnp.float32)
    o_ref[...] = acc.astype(o_ref.dtype)


def _round_up(v, m):
    return ((v + m - 1) // m) * m


def linear_forward(x, weight_t, bias=None, *, tm=256, tn=256, tk=512,
                   compute_dtype=None):
    """Linear forward: y = x @ weight_t + bias.

    x        : [..., in_channels]
    weight_t : [in_channels, out_channels]  -- PyTorch weight transposed ONCE at init.
    bias     : [out_channels] or None
    compute_dtype: e.g. jnp.bfloat16 to use the bf16 MXU path (accumulation stays f32).
    """
    K, N = weight_t.shape
    orig_shape = x.shape
    out_dtype = x.dtype
    x2d = x.reshape(-1, K)
    M = x2d.shape[0]

    if compute_dtype is not None:
        x2d = x2d.astype(compute_dtype)
        weight_t = weight_t.astype(compute_dtype)

    # Effective tile sizes, clamped to the problem so small shapes need no padding.
    tm_e = min(tm, _round_up(M, 8))          # multiple of 8 (sublane) or >= M
    tn_e = N if N <= tn else tn              # full dim, or lane-dense multiple of 128
    tk_e = K if K <= tk else tk

    Mp = _round_up(M, tm_e)
    Np = _round_up(N, tn_e)
    Kp = _round_up(K, tk_e)

    if Mp != M or Kp != K:
        x2d = jnp.pad(x2d, ((0, Mp - M), (0, Kp - K)))
    if Kp != K or Np != N:
        weight_t = jnp.pad(weight_t, ((0, Kp - K), (0, Np - N)))

    kt = Kp // tk_e
    single_k = kt == 1

    in_specs = [
        pl.BlockSpec((tm_e, tk_e), lambda i, j, k: (i, k)),
        pl.BlockSpec((tk_e, tn_e), lambda i, j, k: (k, j)),
    ]
    operands = [x2d, weight_t]

    if bias is not None:
        b2d = bias.reshape(1, N).astype(jnp.float32)
        if Np != N:
            b2d = jnp.pad(b2d, ((0, 0), (0, Np - N)))
        in_specs.append(pl.BlockSpec((1, tn_e), lambda i, j, k: (0, j)))
        operands.append(b2d)
        kernel = _linear_bias_kernel_1k if single_k else _linear_bias_kernel
    else:
        kernel = _linear_nobias_kernel_1k if single_k else _linear_nobias_kernel

    grid = (Mp // tm_e, Np // tn_e, kt)
    scratch_shapes = [] if single_k else [pltpu.VMEM((tm_e, tn_e), jnp.float32)]

    # VMEM budget for the chosen tiles (double-buffered inputs/outputs + f32 acc),
    # with headroom; explicit so enlarged tiles still compile on v5e's 16 MiB scoped
    # default while staying well under v7x's 64 MiB physical VMEM.
    itm = x2d.dtype.itemsize
    vmem_need = (2 * tm_e * tk_e * itm          # x (double-buffered)
                 + 2 * tk_e * tn_e * itm        # weight (double-buffered)
                 + 2 * 1 * tn_e * 4             # bias
                 + 2 * tm_e * tn_e * jnp.dtype(out_dtype).itemsize   # output
                 + (0 if single_k else tm_e * tn_e * 4))             # f32 accumulator
    vmem_limit = int(min(max(2 * vmem_need, 32 * 1024 * 1024), 64 * 1024 * 1024))

    cost = pl.CostEstimate(
        flops=2 * M * K * N,
        transcendentals=0,
        bytes_accessed=(x2d.size * itm
                        + weight_t.size * itm
                        + Mp * Np * jnp.dtype(out_dtype).itemsize),
    )

    out = pl.pallas_call(
        kernel,
        out_shape=jax.ShapeDtypeStruct((Mp, Np), out_dtype),
        grid_spec=pltpu.PrefetchScalarGridSpec(
            num_scalar_prefetch=0,
            grid=grid,
            in_specs=in_specs,
            out_specs=pl.BlockSpec((tm_e, tn_e), lambda i, j, k: (i, j)),
            scratch_shapes=scratch_shapes,
        ),
        compiler_params=pltpu.CompilerParams(
            dimension_semantics=("parallel", "parallel", "arbitrary"),
            vmem_limit_bytes=vmem_limit,
        ),
        cost_estimate=cost,
    )(*operands)

    if Mp != M or Np != N:
        out = out[:M, :N]
    return out.reshape(*orig_shape[:-1], N)


def glorot_uniform(key, out_channels, in_channels, dtype=jnp.float32):
    # Matches torch_geometric inits.glorot: U(-a, a), a = sqrt(6/(fan_in+fan_out))
    a = math.sqrt(6.0 / (in_channels + out_channels))
    return jax.random.uniform(
        key, (out_channels, in_channels), dtype=dtype, minval=-a, maxval=a
    )


if __name__ == "__main__":
    key = jax.random.PRNGKey(0)
    k_x, k_w = jax.random.split(key)

    batch, in_channels, out_channels = 16, 32, 64

    x = jax.random.normal(k_x, (batch, in_channels), dtype=jnp.float32)
    weight = glorot_uniform(k_w, out_channels, in_channels)   # PyTorch layout [out, in]
    bias = jnp.zeros((out_channels,), dtype=jnp.float32)      # 'zeros' init

    # Transpose ONCE at parameter-setup time (not per forward call).
    weight_t = jnp.asarray(weight.T)                          # [in, out]

    # Bias path
    y = linear_forward(x, weight_t, bias)
    jax.block_until_ready(y)
    y_ref = x @ weight.T + bias
    assert y.shape == (batch, out_channels)
    assert jnp.allclose(y, y_ref, atol=1e-5, rtol=1e-5)

    # No-bias path (bias=False in the module): no zeros array is materialized.
    y_nb = linear_forward(x, weight_t, None)
    jax.block_until_ready(y_nb)
    assert jnp.allclose(y_nb, x @ weight.T, atol=1e-5, rtol=1e-5)

    # Leading batch dims are flattened, like F.linear on [..., in_channels].
    x3 = jax.random.normal(jax.random.PRNGKey(1), (2, 8, in_channels), dtype=jnp.float32)
    y3 = linear_forward(x3, weight_t, bias)
    jax.block_until_ready(y3)
    assert y3.shape == (2, 8, out_channels)
    assert jnp.allclose(y3, x3 @ weight.T + bias, atol=1e-5, rtol=1e-5)

    print("KERNEL_OK")
</pallas_src>

<mosaic_0001>
module attributes {stable_mosaic.version = 11 : i64} {
  func.func @_linear_bias_kernel_1k(%arg0: i32, %arg1: i32, %arg2: i32, %arg3: memref<16x32xf32, #tpu.memory_space<vmem>>, %arg4: memref<32x64xf32, #tpu.memory_space<vmem>>, %arg5: memref<1x64xf32, #tpu.memory_space<vmem>>, %arg6: memref<16x64xf32, #tpu.memory_space<vmem>>) attributes {dimension_semantics = [#tpu.dimension_semantics<parallel>, #tpu.dimension_semantics<parallel>, #tpu.dimension_semantics<arbitrary>], iteration_bounds = array<i64: 1, 1, 1>, scalar_prefetch = 0 : i64, scratch_operands = 0 : i64, tpu.core_type = #tpu.core_type<tc>, window_params = [{transform_indices = @transform_0, window_bounds = array<i64: 16, 32>}, {transform_indices = @transform_1, window_bounds = array<i64: 32, 64>}, {transform_indices = @transform_2, window_bounds = array<i64: 1, 64>}, {transform_indices = @transform_3, window_bounds = array<i64: 16, 64>}]} {
    %c0 = arith.constant 0 : index
    %c0_0 = arith.constant 0 : index
    %0 = vector.load %arg3[%c0, %c0_0] : memref<16x32xf32, #tpu.memory_space<vmem>>, vector<16x32xf32>
    %c0_1 = arith.constant 0 : index
    %c0_2 = arith.constant 0 : index
    %1 = vector.load %arg4[%c0_1, %c0_2] : memref<32x64xf32, #tpu.memory_space<vmem>>, vector<32x64xf32>
    %cst = arith.constant dense<0.000000e+00> : vector<16x64xf32>
    %2 = tpu.matmul %0, %1, %cst {dimension_numbers = #tpu.dot_dimension_numbers<[1], [0], [0], [1], [0, 0, 1, 1], [], []>} : vector<16x32xf32>, vector<32x64xf32>, vector<16x64xf32> -> vector<16x64xf32>
    %c0_3 = arith.constant 0 : index
    %c0_4 = arith.constant 0 : index
    %3 = vector.load %arg5[%c0_3, %c0_4] : memref<1x64xf32, #tpu.memory_space<vmem>>, vector<1x64xf32>
    %4 = vector.broadcast %3 : vector<1x64xf32> to vector<16x64xf32>
    %5 = arith.addf %2, %4 : vector<16x64xf32>
    %c0_5 = arith.constant 0 : index
    %c0_6 = arith.constant 0 : index
    %6 = vector.load %arg6[%c0_5, %c0_6] : memref<16x64xf32, #tpu.memory_space<vmem>>, vector<16x64xf32>
    tpu.vector_store %arg6[%c0_5, %c0_6], %5 {strides = array<i32>} : memref<16x64xf32, #tpu.memory_space<vmem>>, vector<16x64xf32>,
    return
  }
  func.func @transform_0(%arg0: i32, %arg1: i32, %arg2: i32) -> (i32, i32) {
    %c0_i32 = arith.constant 0 : i32
    return %arg0, %arg2 : i32, i32
  }
  func.func @transform_1(%arg0: i32, %arg1: i32, %arg2: i32) -> (i32, i32) {
    %c0_i32 = arith.constant 0 : i32
    return %arg2, %arg1 : i32, i32
  }
  func.func @transform_2(%arg0: i32, %arg1: i32, %arg2: i32) -> (i32, i32) {
    %c0_i32 = arith.constant 0 : i32
    %c0_i32_0 = arith.constant 0 : i32
    return %c0_i32, %arg1 : i32, i32
  }
  func.func @transform_3(%arg0: i32, %arg1: i32, %arg2: i32) -> (i32, i32) {
    %c0_i32 = arith.constant 0 : i32
    return %arg0, %arg1 : i32, i32
  }
}

</mosaic_0001>

<bundles_post_ra>
// kernel: tpu_custom_call.1
= control target key start
LH: loop header
LB: loop body
LE: loop exit
PB: predicated region body
PF: predicated region fallthrough
CT: control target
= control target key end

     0   :  { %8 = vsyncpa [#allocation3], 0  ;;  %s337_s0 = inlined_call_operand.hbm [shape: f32[16,32], index: 0, kind: input, shape index: {}]   ;;  %s338_s1 = inlined_call_operand.hbm [shape: f32[32,64], index: 1, kind: input, shape index: {}]   ;;  %s339_s2 = inlined_call_operand.vmem [shape: f32[1,64], index: 2, kind: input, shape index: {}]   ;;  %s340_s3 = inlined_call_operand.hbm [shape: f32[16,64], index: 3, kind: output, shape index: {}]  }
   0x1   :  { %9 = vsyncpa [#allocation6], 0 }
   0x2   :  { %10 = vsyncpa [#allocation4], 0  ;;  %s264_s12 = smov [#allocation2]   ;;  %s192_s16 = scalar_lea.hbm %s337_s0, 256 }
   0x3   :  { %s16_s13 = sshll.u32 %s264_s12, 4  ;;  %p193_p0 = scmp.ne.s32.totalorder %s337_s0, %s192_s16  ;;  %s17_s13 = int_to_ptr.vmem [resolvable:$true] %s16_s13 }
   0x4   :  { %p196_p1 = scmp.lt.u32.totalorder %s192_s16, %s337_s0 }
   0x6   :  { %p198_p2 = pnand %p196_p1, %p193_p0 }
   0x8   :  { %201 = shalt.err (!%p198_p2)
}
   0x9   :  { %s202_s21 = scalar_lea.vmem %s17_s13, 256  ;;  %p207_p4 = scmp.lt.s32.totalorder %s17_s13, %s17_s13 }
   0xa   :  { %p203_p3 = scmp.ne.s32.totalorder %s17_s13, %s202_s21  ;;  %p208_p5 = scmp.lt.s32.totalorder %s202_s21, %s202_s21 }
   0xc   :  { %p209_p6 = por %p208_p5, %p207_p4 }
   0xe   :  { %p210_p7 = pnand %p209_p6, %p203_p3 }
  0x10   :  { %213 = shalt.err (!%p210_p7)
}
  0x11   :  { %s265_s22 = smov 128   ;;  %s266_s23 = smov 8  }
  0x12   :  { %22 = dma.hbm_to_vmem [thread:$0]  %s337_s0, 256, %s17_s13, [#allocation3], %s265_s22, %s265_s22, %s266_s23  }
  0x13   :  { %s267_s26 = smov [#allocation5]   ;;  %s214_s30 = scalar_lea.hbm %s338_s1, 512 }
  0x14   :  { %s28_s27 = sshll.u32 %s267_s26, 4  ;;  %p215_p8 = scmp.ne.s32.totalorder %s338_s1, %s214_s30  ;;  %s29_s27 = int_to_ptr.vmem [resolvable:$true] %s28_s27 }
  0x15   :  { %p218_p9 = scmp.lt.u32.totalorder %s214_s30, %s338_s1 }
  0x17   :  { %p220_p10 = pnand %p218_p9, %p215_p8 }
  0x19   :  { %223 = shalt.err (!%p220_p10)
}
  0x1a   :  { %s224_s8 = scalar_lea.vmem %s29_s27, 512  ;;  %p229_p12 = scmp.lt.s32.totalorder %s29_s27, %s29_s27 }
  0x1b   :  { %p225_p11 = scmp.ne.s32.totalorder %s29_s27, %s224_s8  ;;  %p230_p13 = scmp.lt.s32.totalorder %s224_s8, %s224_s8 }
  0x1d   :  { %p231_p0 = por %p230_p13, %p229_p12 }
  0x1f   :  { %p232_p1 = pnand %p231_p0, %p225_p11 }
  0x21   :  { %235 = shalt.err (!%p232_p1)
}
  0x22   :  { %34 = dma.hbm_to_vmem [thread:$0]  %s338_s1, 512, %s29_s27, [#allocation6], %s265_s22, %s265_s22, %s266_s23  }
  0x23   :  { %258 = dma.done.wait [#allocation3], 256  }
  0x24   :  { %259 = vsyncadd [#allocation3], 4294967040 }
  0x25   :  { %260 = dma.done.wait [#allocation6], 512  }
  0x26   :  { %261 = vsyncadd [#allocation6], 4294966784  ;;  %vm56_vm0 = vcmask 261120   ;;  %v45_v0 = vld [vmem:[#allocation5] sm:$0xff]  ;;  %v46_v1 = vld [vmem:[#allocation5 + $0x8] sm:$0xff]  ;;  %s268_s11 = smov [#allocation7]  }
  0x27   :  { %v47_v2 = vld [vmem:[#allocation5 + $0x10] sm:$0xff]  ;;  %v179_v3 = vpack.c.bf16 %v46_v1, %v45_v0  ;;  %v48_v4 = vld [vmem:[#allocation5 + $0x18] sm:$0xff]  ;;  %s146_s12 = sshll.u32 %s268_s11, 4  ;;  %vm138_vm1 = vcmask 523264   ;;  %s147_s12 = int_to_ptr.vmem [resolvable:$true] %s146_s12 }
  0x28   :  { %v43_v5 = vld [vmem:[#allocation2] sm:$0xff]  ;;  %v183_v6 = vpack.c.bf16 %v48_v4, %v47_v2  ;;  %v44_v7 = vld [vmem:[#allocation2 + $0x8] sm:$0xff]  ;;  %s236_s13 = scalar_lea.vmem %s147_s12, 256  ;;  %p241_p3 = scmp.lt.s32.totalorder %s147_s12, %s147_s12 }
  0x29   :  { %176 = vmatprep.mubr.msk.f32.mxu0 %vm56_vm0, %v43_v5  ;;  %180 = vmatprep.subr.bf16.mxu0 %v179_v3  ;;  %v159_v8 = vld [vmem:[%s339_s2] ss:$0 sm:$0xff]  ;;  %p237_p2 = scmp.ne.s32.totalorder %s147_s12, %s236_s13  ;;  %p242_p4 = scmp.lt.s32.totalorder %s236_s13, %s236_s13 }
  0x2a   :  { %182 = vmatpush3.bf16.msra.mxu0 %v179_v3 }
  0x2b   :  { %184 = vmatprep.subr.bf16.mxu0 %v183_v6  ;;  %p243_p5 = por %p242_p4, %p241_p3 }
  0x2d   :  { %p244_p6 = pnand %p243_p5, %p237_p2 }
  0x2e   :  { %186 = vmatpush3.bf16.msra.mxu0 %v183_v6 }
  0x31   :  { %177 = vmatmul.mubr.msk.f32.vlgmr.msra.gmra.mrb[0].mxu0 %vm56_vm0, %v44_v7 }
 0x104   :  { %v178_v9 = vpop.f32.mrb[0].mxu0 }
 0x105   :  { %v135_v10 = vadd.f32 %v178_v9, %v159_v8  ;;  %v129_v11 = vpop.f32.mrb[1].mxu0 }
 0x106   :  { %v130_v12 = vadd.f32 %v159_v8, %v129_v11 }
 0x107   :  { %140 = vst.msk [vmem:[#allocation7 + $0x8] sm:$0xff] %vm138_vm1, %v135_v10 }
 0x108   :  { %139 = vst.msk [vmem:[#allocation7] sm:$0xff] %vm138_vm1, %v130_v12 }
 0x109   :  { %247 = shalt.err (!%p244_p6)
}
 0x10a   :  { %s248_s2 = scalar_lea.hbm %s340_s3, 256 }
 0x10b   :  { %p249_p7 = scmp.ne.s32.totalorder %s340_s3, %s248_s2  ;;  %p252_p8 = scmp.lt.u32.totalorder %s248_s2, %s340_s3 }
 0x10d   :  { %p254_p9 = pnand %p252_p8, %p249_p7 }
 0x10f   :  { %257 = shalt.err (!%p254_p9)
}
 0x110   :  { %152 = dma.vmem_to_hbm [thread:$0]  %s147_s12, 256, %s340_s3, [#allocation4], %s265_s22, %s265_s22, %s266_s23  }
 0x111   :  { %262 = dma.done.wait [#allocation4], 256  }
 0x112   :  { %263 = vsyncadd [#allocation4], 4294967040 }
 0x113   :  { %156 = vsyncpa [#allocation3], 1 }
 0x114   :  { %157 = vsyncpa [#allocation6], 1 }
 0x115   :  { %158 = vsyncpa [#allocation4], 1 }

</bundles_post_ra>
